<compile_context>
chip_gen: v7x
topology: tpu7x:2x2x1
jax: 0.10.0
libtpu: 0.0.40
codegen_flags: <defaults>
</compile_context>

<pallas_src>
import functools

import jax
import jax.numpy as jnp
from jax import lax
from jax.experimental import pallas as pl
from jax.experimental.pallas import tpu as pltpu


NEG_INF = -1e30  # large finite; avoids inf-inf NaNs


def _round_up(x, m):
    return ((x + m - 1) // m) * m


# --------------------- prologue: fused Q/K/V projection ---------------------

def _qkv_proj_kernel(x_ref, w_ref, qkv_ref):
    # [block_t, d_in_p] @ [d_in_p, 3*d_out_p] on the MXU (bf16 in, f32 acc),
    # stored back as bf16 so the attention kernel streams half the HBM bytes.
    qkv_ref[...] = jnp.dot(
        x_ref[...], w_ref[...], preferred_element_type=jnp.float32
    ).astype(qkv_ref.dtype)


# --------------- flash attention over the precomputed Q/K/V -----------------

def _flash_attn_kernel(
    q_ref, k_ref, v_ref,          # bf16 tiles of precomputed (scaled) Q, K, V
    o_ref,                        # output tile
    m_sc, l_sc, acc_sc,           # f32 online-softmax state (VMEM scratch)
    *, seq_len, seq_len_p, block_kv,
):
    ki = pl.program_id(1)

    @pl.when(ki == 0)
    def _init():
        m_sc[...] = jnp.full_like(m_sc, NEG_INF)
        l_sc[...] = jnp.zeros_like(l_sc)
        acc_sc[...] = jnp.zeros_like(acc_sc)

    def step(mask_padding):
        # scores = q @ k^T without materializing k.T: NT contraction on the
        # MXU directly (bf16 operands, f32 accumulation).
        s = lax.dot_general(
            q_ref[...], k_ref[...], (((1,), (1,)), ((), ())),
            preferred_element_type=jnp.float32,
        )  # [block_q, block_kv]

        m_new = jnp.maximum(m_sc[...], s.max(axis=-1, keepdims=True))
        p = jnp.exp(s - m_new)
        if mask_padding:
            # Zero the softmax weights of padded kv columns. Masking p (not s)
            # keeps even fully-padded tiles exact: they contribute 0 to l/acc.
            col = ki * block_kv + lax.broadcasted_iota(jnp.int32, p.shape, 1)
            p = jnp.where(col < seq_len, p, 0.0)

        alpha = jnp.exp(m_sc[...] - m_new)
        l_sc[...] = alpha * l_sc[...] + p.sum(axis=-1, keepdims=True)
        acc_sc[...] = alpha * acc_sc[...] + jnp.dot(
            p.astype(v_ref.dtype), v_ref[...],
            preferred_element_type=jnp.float32,
        )
        m_sc[...] = m_new

    if seq_len == seq_len_p:
        # No sequence padding: no mask code is traced at all.
        step(False)
    else:
        # Only kv tiles that actually contain padded columns pay for the mask
        # (padding is trailing, so this is at most the last tile or two).
        tile_end = (ki + 1) * block_kv

        @pl.when(tile_end <= seq_len)
        def _unmasked():
            step(False)

        @pl.when(tile_end > seq_len)
        def _masked():
            step(True)

    @pl.when(ki == pl.num_programs(1) - 1)
    def _finalize():
        # Normalize once on the [block_q, d_out_p] accumulator via the EUP
        # reciprocal slot (never divide the [block_q, block_kv] weights).
        o_ref[...] = (
            acc_sc[...] * pl.reciprocal(l_sc[...], approx=True)
        ).astype(o_ref.dtype)


def self_attention_v2(x, w_query, w_key, w_value, *, block_q=256, block_kv=256):
    """SelfAttention_V2 forward.

    x: [T, d_in]; w_*: [d_in, d_out] (nn.Linear weights pre-transposed, so the
    projection is x @ W). Returns the context vectors, [T, d_out].

    Block defaults target v6e/v7x (2x256x256 MXU); pass block_q=block_kv=128
    on v5e (4x128x128 MXU, 16 MiB default scoped VMEM).
    """
    T, d_in = x.shape
    d_out = w_query.shape[1]
    sm_scale = 1.0 / float(d_out) ** 0.5  # keys.shape[-1] ** 0.5 in the module

    # Lane-dense padding: feature dims padded to 128 so every matmul feeds full
    # MXU lanes and the output store is an unmasked vst. Zero padding is
    # mathematically inert; extra rows/cols are sliced off below.
    d_in_p = _round_up(max(d_in, 128), 128)
    d_out_p = _round_up(max(d_out, 128), 128)

    # Sequence tiling: sublane-aligned blocks, clamped to the (128-floored)
    # padded sequence; force one block size to divide the other so T_p is a
    # multiple of both.
    t_align = _round_up(max(T, 128), 8)
    block_q = max(8, min(block_q, t_align))
    block_kv = max(8, min(block_kv, t_align))
    block_q = _round_up(block_q, 8)
    block_kv = _round_up(block_kv, 8)
    if block_q >= block_kv:
        block_q = _round_up(block_q, block_kv)
    else:
        block_kv = _round_up(block_kv, block_q)
    T_p = _round_up(T, max(block_q, block_kv))

    # v7x megacore: give the "parallel" q axis at least 2 blocks so both
    # TensorCores get work (harmless no-op on single-TC v5e/v6e).
    while T_p // block_q < 2 and block_q >= 16 and block_q % 16 == 0:
        block_q //= 2

    f32, bf16 = jnp.float32, jnp.bfloat16

    # bf16 MXU operands (f32 accumulation everywhere below). The softmax scale
    # is folded into W_query on the tiny weight, so Q leaves the projection
    # already scaled.
    x_p = (
        jnp.zeros((T_p, d_in_p), f32).at[:T, :d_in].set(x.astype(f32))
    ).astype(bf16)
    w_qkv_p = (
        jnp.zeros((d_in_p, 3 * d_out_p), f32)
        .at[:d_in, 0 * d_out_p:0 * d_out_p + d_out].set(w_query.astype(f32) * sm_scale)
        .at[:d_in, 1 * d_out_p:1 * d_out_p + d_out].set(w_key.astype(f32))
        .at[:d_in, 2 * d_out_p:2 * d_out_p + d_out].set(w_value.astype(f32))
    ).astype(bf16)

    # ---- prologue: project (scaled) Q, K, V exactly once ----
    # TODO(synk): for very large d_in_p/d_out_p, add a reduction grid axis here
    # instead of holding the full [d_in_p, 3*d_out_p] weight block in VMEM.
    n_rows = T_p // block_q
    qkv_p = pl.pallas_call(
        _qkv_proj_kernel,
        out_shape=jax.ShapeDtypeStruct((T_p, 3 * d_out_p), bf16),
        grid_spec=pltpu.PrefetchScalarGridSpec(
            num_scalar_prefetch=0,
            grid=(n_rows,),
            in_specs=[
                pl.BlockSpec((block_q, d_in_p), lambda i: (i, 0)),
                # Constant block index -> single-buffer the resident weight
                # (saves its second VMEM buffer; matters on v7x's 64 MiB part).
                pl.BlockSpec((d_in_p, 3 * d_out_p), lambda i: (0, 0),
                             pipeline_mode=pl.Buffered(1)),
            ],
            out_specs=pl.BlockSpec((block_q, 3 * d_out_p), lambda i: (i, 0)),
        ),
        compiler_params=pltpu.CompilerParams(
            dimension_semantics=("parallel",),
        ),
    )(x_p, w_qkv_p)

    # ---- flash attention over the precomputed projections ----
    grid = (T_p // block_q, T_p // block_kv)
    kernel = functools.partial(
        _flash_attn_kernel,
        seq_len=T,
        seq_len_p=T_p,
        block_kv=block_kv,
    )
    # NOTE: output kept in x.dtype (f32 here). If the caller accepts bf16,
    # making out_shape bf16 halves the output writeback for free.
    out_p = pl.pallas_call(
        kernel,
        out_shape=jax.ShapeDtypeStruct((T_p, d_out_p), x.dtype),
        grid_spec=pltpu.PrefetchScalarGridSpec(
            num_scalar_prefetch=0,
            grid=grid,
            in_specs=[
                pl.BlockSpec((block_q, d_out_p), lambda qi, ki: (qi, 0)),   # Q
                pl.BlockSpec((block_kv, d_out_p), lambda qi, ki: (ki, 1)),  # K
                pl.BlockSpec((block_kv, d_out_p), lambda qi, ki: (ki, 2)),  # V
            ],
            out_specs=pl.BlockSpec((block_q, d_out_p), lambda qi, ki: (qi, 0)),
            scratch_shapes=[
                pltpu.VMEM((block_q, 1), jnp.float32),        # running max
                pltpu.VMEM((block_q, 1), jnp.float32),        # running denom
                pltpu.VMEM((block_q, d_out_p), jnp.float32),  # output accumulator
            ],
        ),
        compiler_params=pltpu.CompilerParams(
            # q blocks are independent (v7x two-TC sharding); the kv axis
            # carries the online-softmax accumulators -> arbitrary.
            dimension_semantics=("parallel", "arbitrary"),
        ),
    )(qkv_p, qkv_p, qkv_p)

    return out_p[:T, :d_out]


def reference(x, wq, wk, wv):
    q = x @ wq
    k = x @ wk
    v = x @ wv
    scores = q @ k.T
    w = jax.nn.softmax(scores / (k.shape[-1] ** 0.5), axis=-1)
    return w @ v


if __name__ == "__main__":
    # Shapes implied by the module: seq=6, d_in=3, d_out=2.
    T, d_in, d_out = 6, 3, 2

    key = jax.random.PRNGKey(0)
    kx, kq, kk, kv = jax.random.split(key, 4)

    x = jax.random.uniform(kx, (T, d_in), dtype=jnp.float32)
    bound = 1.0 / (d_in ** 0.5)  # nn.Linear-style init, stored as [d_in, d_out]
    w_query = jax.random.uniform(kq, (d_in, d_out), jnp.float32, -bound, bound)
    w_key = jax.random.uniform(kk, (d_in, d_out), jnp.float32, -bound, bound)
    w_value = jax.random.uniform(kv, (d_in, d_out), jnp.float32, -bound, bound)

    out = jax.block_until_ready(self_attention_v2(x, w_query, w_key, w_value))
    ref = reference(x, w_query, w_key, w_value)

    assert out.shape == (T, d_out)
    # Tolerance reflects bf16 MXU operands (f32 accumulation) and the
    # approx reciprocal in the finalize step.
    assert jnp.allclose(out, ref, atol=1e-2, rtol=1e-2), (out, ref)

    print("KERNEL_OK")
</pallas_src>

<mosaic_0001>
module attributes {stable_mosaic.version = 11 : i64} {
  func.func @_qkv_proj_kernel(%arg0: i32, %arg1: memref<64x128xbf16, #tpu.memory_space<vmem>>, %arg2: memref<128x384xbf16, #tpu.memory_space<vmem>>, %arg3: memref<64x384xbf16, #tpu.memory_space<vmem>>) attributes {dimension_semantics = [#tpu.dimension_semantics<parallel>], iteration_bounds = array<i64: 2>, scalar_prefetch = 0 : i64, scratch_operands = 0 : i64, tpu.core_type = #tpu.core_type<tc>, window_params = [{transform_indices = @transform_0, window_bounds = array<i64: 64, 128>}, {pipeline_mode = #tpu.pipeline_mode<synchronous>, transform_indices = @transform_1, window_bounds = array<i64: 128, 384>}, {transform_indices = @transform_2, window_bounds = array<i64: 64, 384>}]} {
    %c0 = arith.constant 0 : index
    %c0_0 = arith.constant 0 : index
    %0 = vector.load %arg1[%c0, %c0_0] : memref<64x128xbf16, #tpu.memory_space<vmem>>, vector<64x128xbf16>
    %c0_1 = arith.constant 0 : index
    %c0_2 = arith.constant 0 : index
    %1 = vector.load %arg2[%c0_1, %c0_2] : memref<128x384xbf16, #tpu.memory_space<vmem>>, vector<128x384xbf16>
    %cst = arith.constant dense<0.000000e+00> : vector<64x384xf32>
    %2 = tpu.matmul %0, %1, %cst {dimension_numbers = #tpu.dot_dimension_numbers<[1], [0], [0], [1], [0, 0, 1, 1], [], []>} : vector<64x128xbf16>, vector<128x384xbf16>, vector<64x384xf32> -> vector<64x384xf32>
    %3 = arith.truncf %2 : vector<64x384xf32> to vector<64x384xbf16>
    %c0_3 = arith.constant 0 : index
    %c0_4 = arith.constant 0 : index
    %4 = vector.load %arg3[%c0_3, %c0_4] : memref<64x384xbf16, #tpu.memory_space<vmem>>, vector<64x384xbf16>
    tpu.vector_store %arg3[%c0_3, %c0_4], %3 {strides = array<i32>} : memref<64x384xbf16, #tpu.memory_space<vmem>>, vector<64x384xbf16>,
    return
  }
  func.func @transform_0(%arg0: i32) -> (i32, i32) {
    %c0_i32 = arith.constant 0 : i32
    %c0_i32_0 = arith.constant 0 : i32
    return %arg0, %c0_i32 : i32, i32
  }
  func.func @transform_1(%arg0: i32) -> (i32, i32) {
    %c0_i32 = arith.constant 0 : i32
    %c0_i32_0 = arith.constant 0 : i32
    %c0_i32_1 = arith.constant 0 : i32
    return %c0_i32, %c0_i32_0 : i32, i32
  }
  func.func @transform_2(%arg0: i32) -> (i32, i32) {
    %c0_i32 = arith.constant 0 : i32
    %c0_i32_0 = arith.constant 0 : i32
    return %arg0, %c0_i32 : i32, i32
  }
}

</mosaic_0001>

<bundles_post_ra>
// kernel: tpu_custom_call.1
= control target key start
LH: loop header
LB: loop body
LE: loop exit
PB: predicated region body
PF: predicated region fallthrough
CT: control target
= control target key end

     0   :  { %7 = vsyncpa [#allocation3], 0  ;;  %s1304_s0 = inlined_call_operand.hbm [shape: bf16[128,128], index: 0, kind: input, shape index: {}]   ;;  %s1305_s1 = inlined_call_operand.hbm [shape: bf16[128,384], index: 1, kind: input, shape index: {}]   ;;  %s1306_s2 = inlined_call_operand.hbm [shape: bf16[128,384], index: 2, kind: output, shape index: {}]  }
   0x1   :  { %9 = vsyncpa [#allocation3 + $0x1], 0 }
   0x2   :  { %10 = vsyncpa [#allocation6], 0 }
   0x3   :  { %11 = vsyncpa [#allocation4], 0 }
   0x4   :  { %13 = vsyncpa [#allocation4 + $0x1], 0  ;;  %s1073_s9 = smov 0   ;;  %s1075_s10 = smov 0  }
   0x5   :  { %s1077_s11 = smov 0   ;;  %s1079_s12 = smov 0  }
   0x6 LB: > { %s1094_s13 = sadd.s32 4294967295, %s1046_s12   ;;  %s704_s14 = sadd.s32 4294967294, %s1046_s12   ;;  %s1046_s12 = sphi %s1079_s12, %s1326_s12   ;;  %s1042_s11 = sphi %s1077_s11, %s1325_s11   ;;  %s1038_s10 = sphi %s1075_s10, %s1324_s10   ;;  %s1034_s9 = sphi %s1073_s9, %s1323_s9  }
   0x7   : > { %p39_p0 = scmp.ne.s32.totalorder %s1038_s10, %s1034_s9  ;;  %p1307_p1 = scmp.eq.s32.totalorder %s1094_s13, 0 }
   0x8   : > { %p90_p3 = scmp.eq.s32.totalorder %s704_s14, 1  ;;  %p705_p5 = scmp.ge.s32.totalorder %s1046_s12, 1 }
   0x9   : > { %p1103_p4 = por %p1307_p1, %p39_p0  ;;  %p97_p7 = scmp.lt.s32.totalorder %s1046_s12, 3 }
   0xa   : > { %p1108_p6 = por %p90_p3, %p39_p0  ;;  %s1048_s18 = smov [#allocation5]  }
   0xb   : > { %s1310_s15 = scalar_select %p1103_p4, 1, 0 }
   0xc   : > { %s1311_s16 = scalar_select %p1108_p6, 1, 0 }
   0xd   : > { %p1113_p8 = pnand %p705_p5, %p97_p7  ;;  %s109_s19 = sshll.u32 %s1048_s18, 4  ;;  %s1117_s19 = int_to_ptr.vmem [resolvable:$true] %s109_s19 }
   0xe   : > { %s1129_s21 = sadd.s32 1, %s1046_s12   ;;  %s26_s22 = sadd.s32 1, %s1042_s11 }
   0xf   : > { %s1312_s17 = scalar_select %p1113_p8, 1, 0 }
  0x10   : > { %p826_p9 = pneg %p1113_p8  ;;  %s23_s23 = ssub.s32 %s1046_s12, %s1129_s21 }
  0x11   : > { %s918_s26 = scalar_lea.hbm %s1305_s1, 3072 }
  0x12   : > { %p1124_p11 = pnand %p826_p9, %p1307_p1  ;;  %p919_p12 = scmp.ne.s32.totalorder %s1305_s1, %s918_s26 }
  0x13   : > { %p925_p5 = scmp.lt.u32.totalorder %s918_s26, %s1305_s1 }
  0x14   : > { %p920_p13 = pneg %p1124_p11 }
  0x16   : > { %p921_p0 = pnand %p920_p13, %p919_p12 }
  0x18   : > { %p922_p3 = pneg %p921_p0 }
  0x1a   : > { %p927_p7 = pnand %p925_p5, %p922_p3 }
  0x1c   : > { %930 = shalt.err (!%p927_p7)
}
  0x1d   : > { %s931_s3 = scalar_lea.vmem %s1117_s19, 3072  ;;  %p939_p2 = scmp.lt.s32.totalorder %s1117_s19, %s1117_s19 }
  0x1e   : > { %p932_p9 = scmp.ne.s32.totalorder %s1117_s19, %s931_s3  ;;  %p940_p6 = scmp.lt.s32.totalorder %s931_s3, %s931_s3 }
  0x20   : > { %p934_p10 = pnand %p932_p9, %p920_p13  ;;  %p941_p4 = por %p940_p6, %p939_p2 }
  0x22   : > { %p935_p1 = pneg %p934_p10 }
  0x24   : > { %p942_p8 = pnand %p941_p4, %p935_p1 }
  0x26   : > { %945 = shalt.err (!%p942_p8)
}
  0x27   : > { %s1049_s4 = smov 192   ;;  %s1050_s5 = smov 12  }
  0x28   : > { %829 = dma.hbm_to_vmem [thread:$0]  (!%p1124_p11), %s1305_s1, 3072, %s1117_s19, [#allocation6], %s1049_s4, %s1049_s4, %s1050_s5  }
  0x29   : > { %p24_p2 = scmp.eq.s32.totalorder %s23_s23, 0  ;;  %p33_p1 = scmp.ne.s32.totalorder %s1042_s11, %s1038_s10 }
  0x2a   : > { %p34_p4 = scmp.eq.s32.totalorder %s1046_s12, 0  ;;  %p839_p6 = scmp.lt.s32.totalorder %s1046_s12, 2 }
  0x2b   : > { %s1160_s8 = scalar_select %p24_p2, %s1042_s11, %s26_s22  }
  0x2c   : > { %p35_p8 = por %p34_p4, %p33_p1  ;;  %p1314_p10 = scmp.eq.s32.totalorder %s1094_s13, 1 }
  0x2d   : > { %s123_s18 = sand.u32 1, %s1042_s11   ;;  %s763_s24 = sshll.u32 %s1046_s12, 9 }
  0x2e   : > { %p1164_p12 = por %p1314_p10, %p33_p1  ;;  %s708_s25 = sshll.u32 %s123_s18, 5 }
  0x2f   : > { %s1173_s27 = scalar_lea.hbm %s1304_s0, %s763_s24  ;;  %s127_s19 = scalar_lea.vmem [#allocation2], %s708_s25 }
  0x30   : > { %s134_s22 = sshll.u32 %s127_s19, 4  ;;  %p1175_p11 = pnand %p839_p6, %p35_p8  ;;  %s1179_s22 = int_to_ptr.vmem [resolvable:$true] %s134_s22 }
  0x31   : > { %s1181_s28 = scalar_lea.sflag [#allocation3], %s123_s18  ;;  %s946_s29 = scalar_lea.hbm %s1173_s27, 512 }
  0x32   : > { %p947_p13 = scmp.ne.s32.totalorder %s1173_s27, %s946_s29  ;;  %p948_p0 = pneg %p1175_p11 }
  0x33   : > { %s951_s4 = scalar_lea.hbm %s1304_s0, 1024  ;;  %p952_p7 = scmp.lt.u32.totalorder %s1173_s27, %s1304_s0 }
  0x34   : > { %p949_p3 = pnand %p948_p0, %p947_p13  ;;  %p953_p9 = scmp.lt.u32.totalorder %s951_s4, %s946_s29 }
  0x35   : > { %p955_p1 = scmp.lt.u32.totalorder %s946_s29, %s1173_s27 }
  0x36   : > { %p950_p5 = pneg %p949_p3  ;;  %p954_p2 = por %p953_p9, %p952_p7 }
  0x38   : > { %p956_p4 = por %p955_p1, %p954_p2 }
  0x3a   : > { %p957_p6 = pnand %p956_p4, %p950_p5 }
  0x3c   : > { %960 = shalt.err (!%p957_p6)
}
  0x3d   : > { %s961_s7 = scalar_lea.vmem %s1179_s22, 512  ;;  %s1051_s18 = smov [#allocation2]  }
  0x3e   : > { %p962_p8 = scmp.ne.s32.totalorder %s1179_s22, %s961_s7  ;;  %s966_s24 = sshll.u32 %s1051_s18, 4  ;;  %s967_s24 = int_to_ptr.vmem [resolvable:$false] %s966_s24 }
  0x3f   : > { %s968_s25 = scalar_lea.vmem %s967_s24, 1024  ;;  %p969_p3 = scmp.lt.s32.totalorder %s1179_s22, %s967_s24 }
  0x40   : > { %p964_p10 = pnand %p962_p8, %p948_p0  ;;  %p970_p7 = scmp.lt.s32.totalorder %s968_s25, %s961_s7 }
  0x42   : > { %p965_p13 = pneg %p964_p10  ;;  %p971_p9 = por %p970_p7, %p969_p3 }
  0x44   : > { %p972_p2 = pnand %p971_p9, %p965_p13 }
  0x46   : > { %975 = shalt.err (!%p972_p2)
}
  0x47   : > { %s1052_s20 = smov 64   ;;  %s1053_s26 = smov 4  }
  0x48   : > { %833 = dma.hbm_to_vmem [thread:$0]  (!%p1175_p11), %s1173_s27, 512, %s1179_s22, %s1181_s28, %s1052_s20, %s1052_s20, %s1053_s26  }
  0x49   : > { %p1317_p0 = scmp.ne.s32.totalorder %s1312_s17, 0 }
  0x4a   : > { %s1212_s19 = sand.u32 (!%p1317_p0), 1, %s1038_s10   ;;  %p1318_p5 = scmp.ne.s32.totalorder (!%p1317_p0), %s1310_s15, 0 }
  0x4b   : > { %146 = sbr.rel (%p1317_p0) target bundleno = 375 (0x177), region = 28  ;;  %s712_s29 = sshll.u32 (!%p1317_p0), %s1212_s19, 5 }
  0x4c   : > { %s149_s30 = scalar_lea.sflag (!%p1317_p0), [#allocation3], %s1212_s19  ;;  %s1216_s3 = scalar_lea.vmem (!%p1317_p0), [#allocation2], %s712_s29 }
  0x52   : > { %1021 = dma.done.wait (%p1318_p5), %s149_s30, 512  }
  0x53   : > { %1023 = vsyncadd (%p1318_p5), %s149_s30, 4294966784  ;;  %p1319_p11 = scmp.eq.s32.totalorder %s1094_s13, 0 }
  0x55   : > { %1025 = dma.done.wait (%p1319_p11), [#allocation6], 3072   ;;  %p1320_p1 = pmov %p1319_p11 }
  0x56   : > { %v1054_v0 = vmov 0   ;;  %v882_v1 = vld [vmem:[#allocation5 + $0x4] ss:$12 sps:$4 sm:$0xff]   ;;  %v884_v2 = vld [vmem:[#allocation5] ss:$12 sps:$4 sm:$0xff]   ;;  %v917_v28 = vld [vmem:[%s1216_s3 + $0x18] sm:$0xff]  }
  0x57   : > { %1027 = vsyncadd (%p1320_p1), [#allocation6], 4294964224  ;;  %404 = vmatprep.mubr.bf16.mxu0 %v1054_v0  ;;  %372 = vmatprep.subr.bf16.mxu0 %v882_v1  ;;  %v885_v3 = vld [vmem:[#allocation5 + $0x1c] ss:$12 sps:$4 sm:$0xff]   ;;  %v887_v4 = vld [vmem:[#allocation5 + $0x18] ss:$12 sps:$4 sm:$0xff]  }
  0x58   : > { %373 = vmatpush1.bf16.msra.mxu0 %v884_v2  ;;  %v888_v5 = vld [vmem:[#allocation5 + $0x34] ss:$12 sps:$4 sm:$0xff]   ;;  %v890_v7 = vld [vmem:[#allocation5 + $0x30] ss:$12 sps:$4 sm:$0xff]   ;;  %v891_v8 = vld [vmem:[#allocation5 + $0x4c] ss:$12 sps:$4 sm:$0xff]  }
  0x59   : > { %374 = vmatprep.subr.bf16.mxu0 %v885_v3  ;;  %v894_v6 = vld [vmem:[#allocation5 + $0x8] ss:$12 sps:$4 sm:$0xff]   ;;  %v898_v9 = vld [vmem:[#allocation5 + $0x20] ss:$12 sps:$4 sm:$0xff]   ;;  %v902_v10 = vld [vmem:[#allocation5 + $0x38] ss:$12 sps:$4 sm:$0xff]  }
  0x5a   : > { %792 = vmatprep.subr.bf16.mxu1 %v894_v6  ;;  %v893_v11 = vld [vmem:[#allocation5 + $0x48] ss:$12 sps:$4 sm:$0xff]   ;;  %v895_v12 = vld [vmem:[#allocation5 + $0x64] ss:$12 sps:$4 sm:$0xff]   ;;  %v897_v13 = vld [vmem:[#allocation5 + $0x60] ss:$12 sps:$4 sm:$0xff]  }
  0x5b   : > { %793 = vmatpush3.bf16.msra.mxu1 %v894_v6  ;;  %v906_v14 = vld [vmem:[#allocation5 + $0x50] ss:$12 sps:$4 sm:$0xff]   ;;  %v911_v16 = vld [vmem:[%s1216_s3] sm:$0xff]   ;;  %v910_v17 = vld [vmem:[#allocation5 + $0x68] ss:$12 sps:$4 sm:$0xff]   ;;  %s816_s15 = smul.u32 96, %s1212_s19 }
  0x5c   : > { %375 = vmatpush1.bf16.msra.mxu0 %v887_v4  ;;  %794 = vmatprep.subr.bf16.mxu1 %v898_v9  ;;  %v899_v15 = vld [vmem:[#allocation5 + $0x7c] ss:$12 sps:$4 sm:$0xff]   ;;  %v901_v18 = vld [vmem:[#allocation5 + $0x78] ss:$12 sps:$4 sm:$0xff]   ;;  %v903_v19 = vld [vmem:[#allocation5 + $0x94] ss:$12 sps:$4 sm:$0xff]  }
  0x5d   : > { %376 = vmatprep.subr.bf16.mxu0 %v888_v5  ;;  %808 = vmatprep.mubr.bf16.mxu1 %v911_v16  ;;  %v912_v20 = vld [vmem:[#allocation5 + $0x80] ss:$12 sps:$4 sm:$0xff]   ;;  %v905_v21 = vld [vmem:[#allocation5 + $0x90] ss:$12 sps:$4 sm:$0xff]   ;;  %v913_v23 = vld [vmem:[#allocation5 + $0x98] ss:$12 sps:$4 sm:$0xff]  }
  0x5e   : > { %v907_v22 = vld [vmem:[#allocation5 + $0xac] ss:$12 sps:$4 sm:$0xff]   ;;  %v909_v24 = vld [vmem:[#allocation5 + $0xa8] ss:$12 sps:$4 sm:$0xff]   ;;  %v915_v25 = vld [vmem:[#allocation5 + $0xb0] ss:$12 sps:$4 sm:$0xff]  }
  0x5f   : > { %795 = vmatpush3.bf16.msra.mxu1 %v898_v9  ;;  %v914_v26 = vld [vmem:[%s1216_s3 + $0x8] sm:$0xff]   ;;  %v916_v27 = vld [vmem:[%s1216_s3 + $0x10] sm:$0xff]   ;;  %s1235_s17 = scalar_lea.vmem [#allocation7], %s816_s15  ;;  %s817_s27 = smul.u32 1536, %s1094_s13 }
  0x60   : > { %377 = vmatpush1.bf16.msra.mxu0 %v890_v7  ;;  %796 = vmatprep.subr.bf16.mxu1 %v902_v10  ;;  %s621_s22 = sshll.u32 %s1235_s17, 4  ;;  %s607_s13 = scalar_lea.sflag [#allocation4], %s1212_s19  ;;  %s1258_s22 = int_to_ptr.vmem [resolvable:$true] %s621_s22 }
  0x61   : > { %378 = vmatprep.subr.bf16.mxu0 %v891_v8  ;;  %s1256_s4 = scalar_lea.hbm %s1306_s2, %s817_s27  ;;  %s976_s5 = scalar_lea.vmem %s1258_s22, 1536 }
  0x62   : > { %p977_p4 = scmp.ne.s32.totalorder %s1258_s22, %s976_s5  ;;  %s1055_s6 = smov [#allocation7]  }
  0x63   : > { %797 = vmatpush3.bf16.msra.mxu1 %v902_v10  ;;  %s980_s7 = sshll.u32 %s1055_s6, 4  ;;  %s981_s7 = int_to_ptr.vmem [resolvable:$false] %s980_s7 }
  0x64   : > { %379 = vmatpush1.bf16.msra.mxu0 %v893_v11  ;;  %798 = vmatprep.subr.bf16.mxu1 %v906_v14  ;;  %p978_p6 = pnand %p977_p4, %p1164_p12  ;;  %s982_s18 = scalar_lea.vmem %s981_s7, 3072 }
  0x65   : > { %380 = vmatprep.subr.bf16.mxu0 %v895_v12  ;;  %p983_p10 = scmp.lt.s32.totalorder %s1258_s22, %s981_s7  ;;  %p984_p13 = scmp.lt.s32.totalorder %s982_s18, %s976_s5 }
  0x66   : > { %p979_p8 = pneg %p978_p6 }
  0x67   : > { %799 = vmatpush3.bf16.msra.mxu1 %v906_v14  ;;  %p985_p3 = por %p984_p13, %p983_p10 }
  0x68   : > { %381 = vmatpush1.bf16.msra.mxu0 %v897_v13  ;;  %800 = vmatprep.subr.bf16.mxu1 %v910_v17 }
  0x69   : > { %382 = vmatprep.subr.bf16.mxu0 %v899_v15  ;;  %p986_p7 = pnand %p985_p3, %p979_p8 }
  0x6b   : > { %801 = vmatpush3.bf16.msra.mxu1 %v910_v17 }
  0x6c   : > { %383 = vmatpush1.bf16.msra.mxu0 %v901_v18  ;;  %802 = vmatprep.subr.bf16.mxu1 %v912_v20 }
  0x6d   : > { %384 = vmatprep.subr.bf16.mxu0 %v903_v19 }
  0x6f   : > { %803 = vmatpush3.bf16.msra.mxu1 %v912_v20 }
  0x70   : > { %385 = vmatpush1.bf16.msra.mxu0 %v905_v21  ;;  %804 = vmatprep.subr.bf16.mxu1 %v913_v23 }
  0x71   : > { %386 = vmatprep.subr.bf16.mxu0 %v907_v22 }
  0x73   : > { %805 = vmatpush3.bf16.msra.mxu1 %v913_v23 }
  0x74   : > { %387 = vmatpush1.bf16.msra.mxu0 %v909_v24  ;;  %806 = vmatprep.subr.bf16.mxu1 %v915_v25 }
  0x77   : > { %405 = vmatmul.mubr.bf16.vlgmr.msra.gmra.mrb[0].mxu0 %v911_v16  ;;  %807 = vmatpush3.bf16.msra.mxu1 %v915_v25 }
  0x78   : > { %414 = vmatprep.mubr.bf16.mxu0 %v1054_v0 }
  0x7a   : > { %809 = vmatmul.mubr.bf16.vlgmr.msra.gmra.mrb[0].mxu1 %v914_v26 }
  0x7b   : > { %812 = vmatprep.mubr.bf16.mxu1 %v916_v27 }
  0x7f   : > { %415 = vmatmul.mubr.bf16.gmra.mrb[4].mxu0 %v914_v26 }
  0x80   : > { %424 = vmatprep.mubr.bf16.mxu0 %v1054_v0 }
  0x82   : > { %813 = vmatmul.mubr.bf16.gmra.mrb[4].mxu1 %v917_v28 }
  0x87   : > { %425 = vmatmul.mubr.bf16.gmra.mrb[8].mxu0 %v916_v27 }
  0x88   : > { %434 = vmatprep.mubr.bf16.mxu0 %v1054_v0 }
  0x8f   : > { %435 = vmatmul.mubr.bf16.gmra.mrb[12].mxu0 %v917_v28 }
 0x14a   : > { %v406_v29 = vpop.f32.mrb[0].mxu0 }
 0x14b   : > { %v408_v30 = vpop.f32.mrb[1].mxu0 }
 0x14c   : > { %v764_v31 = vpack.c.bf16 %v408_v30, %v406_v29  ;;  %v410_v32 = vpop.f32.mrb[2].mxu0 }
 0x14d   : > { %v412_v33 = vpop.f32.mrb[3].mxu0  ;;  %v810_v35 = vpop.f32.mrb[0].mxu1 }
 0x14e   : > { %590 = vst [vmem:[%s1235_s17] sm:$0xff] %v764_v31  ;;  %v766_v34 = vpack.c.bf16 %v412_v33, %v410_v32  ;;  %v769_v36 = vpack.c.bf16 %v810_v35, %v810_v35  ;;  %v479_v37 = vpop.f32.mrb[1].mxu1 }
 0x14f   : > { %v765_v39 = vpack.c.bf16 %v479_v37, %v479_v37  ;;  %v811_v40 = vpop.f32.mrb[2].mxu1 }
 0x150   : > { %592 = vst [vmem:[%s1235_s17 + $0xc] sm:$0xff] %v766_v34  ;;  %595 = vst [vmem:[%s1235_s17 + $0x20] sm:$0xf] %v769_v36  ;;  %v771_v42 = vpack.c.bf16 %v811_v40, %v811_v40  ;;  %v482_v43 = vpop.f32.mrb[3].mxu1 }
 0x151   : > { %591 = vst [vmem:[%s1235_s17 + $0x8] sm:$0xf] %v765_v39  ;;  %v767_v46 = vpack.c.bf16 %v482_v43, %v482_v43 }
 0x152   : > { %v416_v38 = vpop.f32.mrb[4].mxu0  ;;  %597 = vst [vmem:[%s1235_s17 + $0x2c] sm:$0xf] %v771_v42 }
 0x153   : > { %v418_v41 = vpop.f32.mrb[5].mxu0  ;;  %593 = vst [vmem:[%s1235_s17 + $0x14] sm:$0xf] %v767_v46 }
 0x154   : > { %v768_v44 = vpack.c.bf16 %v418_v41, %v416_v38  ;;  %v420_v45 = vpop.f32.mrb[6].mxu0 }
 0x155   : > { %v422_v47 = vpop.f32.mrb[7].mxu0  ;;  %v814_v49 = vpop.f32.mrb[4].mxu1 }
 0x156   : > { %594 = vst [vmem:[%s1235_s17 + $0x18] sm:$0xff] %v768_v44  ;;  %v770_v48 = vpack.c.bf16 %v422_v47, %v420_v45  ;;  %v777_v50 = vpack.c.bf16 %v814_v49, %v814_v49  ;;  %v495_v51 = vpop.f32.mrb[5].mxu1 }
 0x157   : > { %v773_v53 = vpack.c.bf16 %v495_v51, %v495_v51  ;;  %v815_v54 = vpop.f32.mrb[6].mxu1 }
 0x158   : > { %596 = vst [vmem:[%s1235_s17 + $0x24] sm:$0xff] %v770_v48  ;;  %603 = vst [vmem:[%s1235_s17 + $0x50] sm:$0xf] %v777_v50  ;;  %v779_v56 = vpack.c.bf16 %v815_v54, %v815_v54  ;;  %v498_v57 = vpop.f32.mrb[7].mxu1 }
 0x159   : > { %599 = vst [vmem:[%s1235_s17 + $0x38] sm:$0xf] %v773_v53  ;;  %v775_v60 = vpack.c.bf16 %v498_v57, %v498_v57 }
 0x15a   : > { %v426_v52 = vpop.f32.mrb[8].mxu0  ;;  %605 = vst [vmem:[%s1235_s17 + $0x5c] sm:$0xf] %v779_v56 }
 0x15b   : > { %v428_v55 = vpop.f32.mrb[9].mxu0  ;;  %601 = vst [vmem:[%s1235_s17 + $0x44] sm:$0xf] %v775_v60 }
 0x15c   : > { %v772_v58 = vpack.c.bf16 %v428_v55, %v426_v52  ;;  %v430_v59 = vpop.f32.mrb[10].mxu0 }
 0x15d   : > { %v432_v61 = vpop.f32.mrb[11].mxu0 }
 0x15e   : > { %598 = vst [vmem:[%s1235_s17 + $0x30] sm:$0xff] %v772_v58  ;;  %v774_v62 = vpack.c.bf16 %v432_v61, %v430_v59 }
 0x160   : > { %600 = vst [vmem:[%s1235_s17 + $0x3c] sm:$0xff] %v774_v62 }
 0x162   : > { %v436_v63 = vpop.f32.mrb[12].mxu0 }
 0x163   : > { %v438_v0 = vpop.f32.mrb[13].mxu0 }
 0x164   : > { %v776_v1 = vpack.c.bf16 %v438_v0, %v436_v63  ;;  %v440_v2 = vpop.f32.mrb[14].mxu0 }
 0x165   : > { %v442_v3 = vpop.f32.mrb[15].mxu0 }
 0x166   : > { %602 = vst [vmem:[%s1235_s17 + $0x48] sm:$0xff] %v776_v1  ;;  %v778_v4 = vpack.c.bf16 %v442_v3, %v440_v2 }
 0x168   : > { %604 = vst [vmem:[%s1235_s17 + $0x54] sm:$0xff] %v778_v4 }
 0x169   : > { %989 = shalt.err (!%p986_p7)
}
 0x16a   : > { %s990_s24 = scalar_lea.hbm %s1256_s4, 1536  ;;  %s994_s26 = scalar_lea.hbm %s1306_s2, 3072 }
 0x16b   : > { %p991_p9 = scmp.ne.s32.totalorder %s1256_s4, %s990_s24  ;;  %p995_p5 = scmp.lt.u32.totalorder %s1256_s4, %s1306_s2 }
 0x16c   : > { %p996_p11 = scmp.lt.u32.totalorder %s994_s26, %s990_s24  ;;  %p998_p4 = scmp.lt.u32.totalorder %s990_s24, %s1256_s4 }
 0x16d   : > { %p992_p2 = pnand %p991_p9, %p1164_p12 }
 0x16e   : > { %p997_p1 = por %p996_p11, %p995_p5 }
 0x16f   : > { %p993_p0 = pneg %p992_p2 }
 0x170   : > { %p999_p6 = por %p998_p4, %p997_p1 }
 0x172   : > { %p1000_p8 = pnand %p999_p6, %p993_p0 }
 0x174   : > { %1003 = shalt.err (!%p1000_p8)
}
 0x175   : > { %s1056_s3 = smov 192   ;;  %s1057_s15 = smov 12  }
 0x176   : > { %824 = dma.vmem_to_hbm [thread:$0]  (%p1164_p12), %s1258_s22, 1536, %s1256_s4, %s607_s13, %s1056_s3, %s1056_s3, %s1057_s15  }
 0x177 PF: > { %s636_s17 = sand.u32 1, %s1034_s9   ;;  %p1321_p10 = scmp.ne.s32.totalorder %s1311_s16, 0 }
 0x178   : > { %p1322_p13 = scmp.ge.s32.totalorder %s1046_s12, 2  ;;  %s637_s27 = scalar_lea.sflag [#allocation4], %s636_s17 }
 0x17a   : > { %p835_p3 = pnand %p1322_p13, %p1321_p10 }
 0x17c   : > { %1029 = dma.done.wait (!%p835_p3), %s637_s27, 1536  }
 0x17d   : > { %1031 = vsyncadd (!%p835_p3), %s637_s27, 4294965760  ;;  %p16_p7 = scmp.ge.s32.totalorder %s1129_s21, 4   ;;  %s1323_s9 = smov %s1038_s10 }
 0x17e   : > { %s1324_s10 = smov %s1042_s11  ;;  %s1325_s11 = smov %s1160_s8 }
 0x17f   : > { %s1326_s12 = smov %s1129_s21  ;;  %18 = sbr.rel (!%p16_p7) target bundleno = 6 (0x6), region = 77 }
 0x186   :  { %642 = vsyncpa [#allocation3], 1 }
 0x187   :  { %644 = vsyncpa [#allocation3 + $0x1], 1 }
 0x188   :  { %645 = vsyncpa [#allocation6], 1 }
 0x189   :  { %646 = vsyncpa [#allocation4], 1 }
 0x18a   :  { %648 = vsyncpa [#allocation4 + $0x1], 1 }

</bundles_post_ra>
